<compile_context>
chip_gen: v5e
topology: v5e:2x2
jax: 0.10.0
libtpu: 0.0.40
codegen_flags: <defaults>
</compile_context>

<pallas_src>
import functools

import jax
import jax.numpy as jnp
from jax import lax
from jax.experimental import pallas as pl
from jax.experimental.pallas import tpu as pltpu


_VMEM_LIMIT_BYTES = 48 * 1024 * 1024   # scoped limit: fits v7x (64 MiB) and v5e/v6e
_VMEM_BUDGET_BYTES = 36 * 1024 * 1024  # working budget used for tile sizing


def _round_up(x, m):
    return (x + m - 1) // m * m


def _pad2(x, rows, cols):
    return jnp.pad(x, ((0, rows - x.shape[0]), (0, cols - x.shape[1])))


def _choose_tile_n(n, e_pad, din, dv_pad, de_pad, max_tile_n):
    """Largest N tile (multiple of 8) whose double-buffered blocks fit the budget."""
    resident = (e_pad * dv_pad * 4      # f32 efeat accumulator scratch
                + e_pad * dv_pad * 2    # bf16 invDE-scaled efeat output
                + e_pad * de_pad * 4    # eout output
                + e_pad * 4             # invDE column
                + din * dv_pad * 2 + dv_pad * de_pad * 2
                + (dv_pad + de_pad) * 4)
    per_row = 2 * (e_pad * 2            # H tile (bf16), double-buffered
                   + din * 2            # vfeat tile (bf16)
                   + 4                  # DV2 column (f32)
                   + dv_pad * 4         # dropout-mask tile (f32)
                   + dv_pad * 4)        # vout tile (f32)
    tile = (_VMEM_BUDGET_BYTES - resident) // max(per_row, 1)
    tile = max(8, min(int(tile), int(max_tile_n), _round_up(n, 8)))
    return (tile // 8) * 8


def _edge_kernel(vfeat_ref, h_ref, dv2_ref, invde_ref,
                 wv_ref, bv_ref, we_ref, be_ref,
                 efs_ref, eout_ref, acc_ref):
    """Stage 1: accumulate efeat = H^T @ (DV2*Wh) over N tiles; finalize lin_e."""
    @pl.when(pl.program_id(0) == 0)
    def _init():
        acc_ref[...] = jnp.zeros_like(acc_ref)

    # lin_v on the MXU: bf16 x bf16 -> f32 accumulate, f32 bias add.
    wh = jnp.dot(vfeat_ref[...], wv_ref[...],
                 preferred_element_type=jnp.float32) + bv_ref[...]

    # node -> hyperedge partial sum: contract over the tile's row axis directly
    # (no transposed copy of H is ever materialized or DMA'd).
    scaled = (dv2_ref[...] * wh).astype(jnp.bfloat16)
    acc_ref[...] += lax.dot_general(
        h_ref[...], scaled,
        dimension_numbers=(((0,), (0,)), ((), ())),
        preferred_element_type=jnp.float32)

    @pl.when(pl.program_id(0) == pl.num_programs(0) - 1)
    def _finalize():
        efeat = acc_ref[...]
        # invDE-scaled bf16 copy consumed by the node-update kernel (call 2).
        efs_ref[...] = (invde_ref[...] * efeat).astype(efs_ref.dtype)
        # lin_e on the hyperedge features.
        eout_ref[...] = (jnp.dot(efeat.astype(jnp.bfloat16), we_ref[...],
                                 preferred_element_type=jnp.float32)
                         + be_ref[...]).astype(eout_ref.dtype)


def _node_kernel(h_ref, dv2_ref, efs_ref, mask_ref, vout_ref):
    """Stage 2: vnew = DV2 * (H_tile @ (invDE*efeat)); relu; inverted dropout."""
    vnew = dv2_ref[...] * jnp.dot(h_ref[...], efs_ref[...],
                                  preferred_element_type=jnp.float32)
    vout_ref[...] = (jnp.maximum(vnew, 0.0) * mask_ref[...]).astype(vout_ref.dtype)


def hgnn_forward(vfeat, H, DV2, invDE, Wv, bv, We, be, *,
                 p=0.5, dropout_key=None, max_tile_n=1024):
    """HGNNLayer forward.  Weights are pre-transposed to (in, out)."""
    N, Din = vfeat.shape
    E = H.shape[1]
    Dv = Wv.shape[1]
    De = We.shape[1]

    f32, bf16 = jnp.float32, jnp.bfloat16

    # Lane-dense padding of feature dims; sublane/lane-friendly padding of E, N.
    dv_pad = _round_up(Dv, 128)
    de_pad = _round_up(De, 128)
    e_pad = _round_up(E, 128)
    tile_n = _choose_tile_n(N, e_pad, Din, dv_pad, de_pad, max_tile_n)
    n_pad = _round_up(N, tile_n)
    grid_n = n_pad // tile_n

    # Layout prep only (padding + dtype).  H is 0/1 so the bf16 cast is lossless.
    vfeat_p = _pad2(vfeat.astype(f32), n_pad, Din).astype(bf16)
    h_p = _pad2(H.astype(f32), n_pad, e_pad).astype(bf16)
    dv2_p = _pad2(DV2.reshape(N, 1).astype(f32), n_pad, 1)     # zero pad rows kill
    invde_p = _pad2(invDE.reshape(E, 1).astype(f32), e_pad, 1)  # padded contributions
    wv_p = _pad2(Wv.astype(f32), Din, dv_pad).astype(bf16)
    bv_p = _pad2(bv.reshape(1, Dv).astype(f32), 1, dv_pad)
    we_p = _pad2(We.astype(f32), dv_pad, de_pad).astype(bf16)
    be_p = _pad2(be.reshape(1, De).astype(f32), 1, de_pad)

    # TODO(synk): dropout mask is generated host-side with jax.random because
    # pltpu.prng_seed / prng_random_bits have no CPU/interpret lowering in this
    # sandbox; on a TPU-only deployment it can move back in-kernel with a
    # per-tile-salted pltpu.prng_seed to remove the (N, Dv) mask HBM traffic.
    if dropout_key is None:
        dropout_key = jax.random.PRNGKey(0)
    if 0.0 < p < 1.0:
        keep = jax.random.bernoulli(dropout_key, 1.0 - p, (N, Dv))
        mask = keep.astype(f32) * (1.0 / (1.0 - p))
    elif p <= 0.0:
        mask = jnp.ones((N, Dv), f32)
    else:
        mask = jnp.zeros((N, Dv), f32)
    mask_p = _pad2(mask, n_pad, dv_pad)

    cparams_red = pltpu.CompilerParams(dimension_semantics=("arbitrary",),
                                       vmem_limit_bytes=_VMEM_LIMIT_BYTES)
    cparams_par = pltpu.CompilerParams(dimension_semantics=("parallel",),
                                       vmem_limit_bytes=_VMEM_LIMIT_BYTES)

    # ---------- call 1: node -> hyperedge accumulation + lin_e ----------
    cost1 = pl.CostEstimate(
        flops=int(2 * n_pad * Din * dv_pad + 2 * n_pad * e_pad * dv_pad
                  + 2 * e_pad * dv_pad * de_pad),
        transcendentals=0,
        bytes_accessed=int(vfeat_p.size * 2 + h_p.size * 2 + dv2_p.size * 4
                           + invde_p.size * 4 + wv_p.size * 2 + we_p.size * 2
                           + (bv_p.size + be_p.size) * 4
                           + e_pad * dv_pad * 2 + e_pad * de_pad * 4))

    efs, eout_p = pl.pallas_call(
        _edge_kernel,
        out_shape=(jax.ShapeDtypeStruct((e_pad, dv_pad), bf16),
                   jax.ShapeDtypeStruct((e_pad, de_pad), f32)),
        grid_spec=pltpu.PrefetchScalarGridSpec(
            num_scalar_prefetch=0,
            grid=(grid_n,),
            in_specs=[
                pl.BlockSpec((tile_n, Din),     lambda i: (i, 0)),
                pl.BlockSpec((tile_n, e_pad),   lambda i: (i, 0)),
                pl.BlockSpec((tile_n, 1),       lambda i: (i, 0)),
                pl.BlockSpec((e_pad, 1),        lambda i: (0, 0)),
                pl.BlockSpec((Din, dv_pad),     lambda i: (0, 0)),
                pl.BlockSpec((1, dv_pad),       lambda i: (0, 0)),
                pl.BlockSpec((dv_pad, de_pad),  lambda i: (0, 0)),
                pl.BlockSpec((1, de_pad),       lambda i: (0, 0)),
            ],
            out_specs=[
                pl.BlockSpec((e_pad, dv_pad),   lambda i: (0, 0)),
                pl.BlockSpec((e_pad, de_pad),   lambda i: (0, 0)),
            ],
            scratch_shapes=[pltpu.VMEM((e_pad, dv_pad), f32)],
        ),
        compiler_params=cparams_red,
        cost_estimate=cost1,
    )(vfeat_p, h_p, dv2_p, invde_p, wv_p, bv_p, we_p, be_p)

    # ---------- call 2: hyperedge -> node + relu + dropout ----------
    cost2 = pl.CostEstimate(
        flops=int(2 * n_pad * e_pad * dv_pad + 3 * n_pad * dv_pad),
        transcendentals=0,
        bytes_accessed=int(h_p.size * 2 + efs.size * 2 + dv2_p.size * 4
                           + mask_p.size * 4 + n_pad * dv_pad * 4))

    vout_p = pl.pallas_call(
        _node_kernel,
        out_shape=jax.ShapeDtypeStruct((n_pad, dv_pad), f32),
        grid_spec=pltpu.PrefetchScalarGridSpec(
            num_scalar_prefetch=0,
            grid=(grid_n,),
            in_specs=[
                pl.BlockSpec((tile_n, e_pad),   lambda i: (i, 0)),
                pl.BlockSpec((tile_n, 1),       lambda i: (i, 0)),
                pl.BlockSpec((e_pad, dv_pad),   lambda i: (0, 0)),
                pl.BlockSpec((tile_n, dv_pad),  lambda i: (i, 0)),
            ],
            out_specs=pl.BlockSpec((tile_n, dv_pad), lambda i: (i, 0)),
        ),
        compiler_params=cparams_par,
        cost_estimate=cost2,
    )(h_p, dv2_p, efs, mask_p)

    return vout_p[:N, :Dv], eout_p[:E, :De]


if __name__ == "__main__":
    # small shapes: 500 nodes, 96 hyperedges, input_dim=16, vertex_dim=32, edge_dim=8
    N, E, Din, Dv, De = 500, 96, 16, 32, 8
    p_drop = 0.5

    key = jax.random.PRNGKey(0)
    k = jax.random.split(key, 9)

    vfeat = jax.random.normal(k[0], (N, Din), dtype=jnp.float32)
    H = jax.random.bernoulli(k[1], 0.25, (N, E)).astype(jnp.float32)  # incidence
    DV2 = jax.random.uniform(k[2], (N,), minval=0.1, maxval=1.0, dtype=jnp.float32)
    invDE = jax.random.uniform(k[3], (E,), minval=0.1, maxval=1.0, dtype=jnp.float32)

    # deterministic "nn.Linear"-style params (weights stored as (in, out))
    bnd_v = 1.0 / (Din ** 0.5)
    Wv = jax.random.uniform(k[4], (Din, Dv), minval=-bnd_v, maxval=bnd_v, dtype=jnp.float32)
    bv = jax.random.uniform(k[5], (Dv,), minval=-bnd_v, maxval=bnd_v, dtype=jnp.float32)
    bnd_e = 1.0 / (Dv ** 0.5)
    We = jax.random.uniform(k[6], (Dv, De), minval=-bnd_e, maxval=bnd_e, dtype=jnp.float32)
    be = jax.random.uniform(k[7], (De,), minval=-bnd_e, maxval=bnd_e, dtype=jnp.float32)
    drop_key = k[8]

    # max_tile_n=128 -> 4 N-tiles, exercising the streamed/accumulated path.
    vout, eout = hgnn_forward(vfeat, H, DV2, invDE, Wv, bv, We, be,
                              p=p_drop, dropout_key=drop_key, max_tile_n=128)
    jax.block_until_ready((vout, eout))
    assert vout.shape == (N, Dv) and eout.shape == (E, De)

    # pure-JAX reference mirroring the kernel's bf16-operand / f32-accumulate matmuls
    bf = lambda x: x.astype(jnp.bfloat16).astype(jnp.float32)
    Wh_ref = bf(vfeat) @ bf(Wv) + bv
    efeat_ref = H.T @ bf(DV2[:, None] * Wh_ref)
    eout_ref = bf(efeat_ref) @ bf(We) + be
    vnew_ref = DV2[:, None] * (H @ bf(invDE[:, None] * efeat_ref))
    vrelu_ref = jnp.maximum(vnew_ref, 0.0)
    keep_ref = jax.random.bernoulli(drop_key, 1.0 - p_drop, (N, Dv))
    vout_ref = jnp.where(keep_ref, vrelu_ref / (1.0 - p_drop), 0.0)

    assert jnp.allclose(eout, eout_ref, rtol=5e-3, atol=5e-2), \
        float(jnp.max(jnp.abs(eout - eout_ref)))
    assert jnp.allclose(vout, vout_ref, rtol=5e-3, atol=5e-2), \
        float(jnp.max(jnp.abs(vout - vout_ref)))

    print("KERNEL_OK")
</pallas_src>

<mosaic_0001>
module attributes {stable_mosaic.version = 11 : i64} {
  func.func @_edge_kernel(%arg0: i32, %arg1: memref<128x16xbf16, #tpu.memory_space<vmem>>, %arg2: memref<128x128xbf16, #tpu.memory_space<vmem>>, %arg3: memref<128x1xf32, #tpu.memory_space<vmem>>, %arg4: memref<128x1xf32, #tpu.memory_space<vmem>>, %arg5: memref<16x128xbf16, #tpu.memory_space<vmem>>, %arg6: memref<1x128xf32, #tpu.memory_space<vmem>>, %arg7: memref<128x128xbf16, #tpu.memory_space<vmem>>, %arg8: memref<1x128xf32, #tpu.memory_space<vmem>>, %arg9: memref<128x128xbf16, #tpu.memory_space<vmem>>, %arg10: memref<128x128xf32, #tpu.memory_space<vmem>>, %arg11: memref<128x128xf32, #tpu.memory_space<vmem>>) attributes {dimension_semantics = [#tpu.dimension_semantics<arbitrary>], iteration_bounds = array<i64: 4>, scalar_prefetch = 0 : i64, scratch_operands = 1 : i64, tpu.core_type = #tpu.core_type<tc>, window_params = [{transform_indices = @transform_0, window_bounds = array<i64: 128, 16>}, {transform_indices = @transform_1, window_bounds = array<i64: 128, 128>}, {transform_indices = @transform_2, window_bounds = array<i64: 128, 1>}, {pipeline_mode = #tpu.pipeline_mode<synchronous>, transform_indices = @transform_3, window_bounds = array<i64: 128, 1>}, {pipeline_mode = #tpu.pipeline_mode<synchronous>, transform_indices = @transform_4, window_bounds = array<i64: 16, 128>}, {pipeline_mode = #tpu.pipeline_mode<synchronous>, transform_indices = @transform_5, window_bounds = array<i64: 1, 128>}, {pipeline_mode = #tpu.pipeline_mode<synchronous>, transform_indices = @transform_6, window_bounds = array<i64: 128, 128>}, {pipeline_mode = #tpu.pipeline_mode<synchronous>, transform_indices = @transform_7, window_bounds = array<i64: 1, 128>}, {pipeline_mode = #tpu.pipeline_mode<synchronous>, transform_indices = @transform_8, window_bounds = array<i64: 128, 128>}, {pipeline_mode = #tpu.pipeline_mode<synchronous>, transform_indices = @transform_9, window_bounds = array<i64: 128, 128>}]} {
    %c0_i32 = arith.constant 0 : i32
    %0 = arith.cmpi eq, %arg0, %c0_i32 : i32
    %1 = arith.extui %0 : i1 to i32
    %c0_i32_0 = arith.constant 0 : i32
    %2 = arith.cmpi ne, %1, %c0_i32_0 : i32
    scf.if %2 {
      %cst_16 = arith.constant 0.000000e+00 : f32
      %21 = vector.broadcast %cst_16 : f32 to vector<128x128xf32>
      %c0_17 = arith.constant 0 : index
      %c0_18 = arith.constant 0 : index
      %22 = vector.load %arg11[%c0_17, %c0_18] : memref<128x128xf32, #tpu.memory_space<vmem>>, vector<128x128xf32>
      tpu.vector_store %arg11[%c0_17, %c0_18], %21 {strides = array<i32>} : memref<128x128xf32, #tpu.memory_space<vmem>>, vector<128x128xf32>,
    } else {
    }
    %c0 = arith.constant 0 : index
    %c0_1 = arith.constant 0 : index
    %3 = vector.load %arg1[%c0, %c0_1] : memref<128x16xbf16, #tpu.memory_space<vmem>>, vector<128x16xbf16>
    %c0_2 = arith.constant 0 : index
    %c0_3 = arith.constant 0 : index
    %4 = vector.load %arg5[%c0_2, %c0_3] : memref<16x128xbf16, #tpu.memory_space<vmem>>, vector<16x128xbf16>
    %cst = arith.constant dense<0.000000e+00> : vector<128x128xf32>
    %5 = tpu.matmul %3, %4, %cst {dimension_numbers = #tpu.dot_dimension_numbers<[1], [0], [0], [1], [0, 0, 1, 1], [], []>} : vector<128x16xbf16>, vector<16x128xbf16>, vector<128x128xf32> -> vector<128x128xf32>
    %c0_4 = arith.constant 0 : index
    %c0_5 = arith.constant 0 : index
    %6 = vector.load %arg6[%c0_4, %c0_5] : memref<1x128xf32, #tpu.memory_space<vmem>>, vector<1x128xf32>
    %7 = vector.broadcast %6 : vector<1x128xf32> to vector<128x128xf32>
    %8 = arith.addf %5, %7 : vector<128x128xf32>
    %c0_6 = arith.constant 0 : index
    %c0_7 = arith.constant 0 : index
    %9 = vector.load %arg3[%c0_6, %c0_7] : memref<128x1xf32, #tpu.memory_space<vmem>>, vector<128x1xf32>
    %10 = vector.broadcast %9 : vector<128x1xf32> to vector<128x128xf32>
    %11 = arith.mulf %10, %8 : vector<128x128xf32>
    %12 = arith.truncf %11 : vector<128x128xf32> to vector<128x128xbf16>
    %c0_8 = arith.constant 0 : index
    %c0_9 = arith.constant 0 : index
    %13 = vector.load %arg11[%c0_8, %c0_9] : memref<128x128xf32, #tpu.memory_space<vmem>>, vector<128x128xf32>
    %c0_10 = arith.constant 0 : index
    %c0_11 = arith.constant 0 : index
    %14 = vector.load %arg2[%c0_10, %c0_11] : memref<128x128xbf16, #tpu.memory_space<vmem>>, vector<128x128xbf16>
    %cst_12 = arith.constant dense<0.000000e+00> : vector<128x128xf32>
    %15 = tpu.matmul %14, %12, %cst_12 {dimension_numbers = #tpu.dot_dimension_numbers<[0], [0], [1], [1], [0, 1, 1, 1], [], []>} : vector<128x128xbf16>, vector<128x128xbf16>, vector<128x128xf32> -> vector<128x128xf32>
    %16 = arith.addf %13, %15 : vector<128x128xf32>
    %c0_13 = arith.constant 0 : index
    %c0_14 = arith.constant 0 : index
    %17 = vector.load %arg11[%c0_13, %c0_14] : memref<128x128xf32, #tpu.memory_space<vmem>>, vector<128x128xf32>
    tpu.vector_store %arg11[%c0_13, %c0_14], %16 {strides = array<i32>} : memref<128x128xf32, #tpu.memory_space<vmem>>, vector<128x128xf32>,
    %c3_i32 = arith.constant 3 : i32
    %18 = arith.cmpi eq, %arg0, %c3_i32 : i32
    %19 = arith.extui %18 : i1 to i32
    %c0_i32_15 = arith.constant 0 : i32
    %20 = arith.cmpi ne, %19, %c0_i32_15 : i32
    scf.if %20 {
      %c0_16 = arith.constant 0 : index
      %c0_17 = arith.constant 0 : index
      %21 = vector.load %arg11[%c0_16, %c0_17] : memref<128x128xf32, #tpu.memory_space<vmem>>, vector<128x128xf32>
      %c0_18 = arith.constant 0 : index
      %c0_19 = arith.constant 0 : index
      %22 = vector.load %arg4[%c0_18, %c0_19] : memref<128x1xf32, #tpu.memory_space<vmem>>, vector<128x1xf32>
      %23 = vector.broadcast %22 : vector<128x1xf32> to vector<128x128xf32>
      %24 = arith.mulf %23, %21 : vector<128x128xf32>
      %25 = arith.truncf %24 : vector<128x128xf32> to vector<128x128xbf16>
      %c0_20 = arith.constant 0 : index
      %c0_21 = arith.constant 0 : index
      %26 = vector.load %arg9[%c0_20, %c0_21] : memref<128x128xbf16, #tpu.memory_space<vmem>>, vector<128x128xbf16>
      tpu.vector_store %arg9[%c0_20, %c0_21], %25 {strides = array<i32>} : memref<128x128xbf16, #tpu.memory_space<vmem>>, vector<128x128xbf16>,
      %27 = arith.truncf %21 : vector<128x128xf32> to vector<128x128xbf16>
      %c0_22 = arith.constant 0 : index
      %c0_23 = arith.constant 0 : index
      %28 = vector.load %arg7[%c0_22, %c0_23] : memref<128x128xbf16, #tpu.memory_space<vmem>>, vector<128x128xbf16>
      %cst_24 = arith.constant dense<0.000000e+00> : vector<128x128xf32>
      %29 = tpu.matmul %27, %28, %cst_24 {dimension_numbers = #tpu.dot_dimension_numbers<[1], [0], [0], [1], [0, 0, 1, 1], [], []>} : vector<128x128xbf16>, vector<128x128xbf16>, vector<128x128xf32> -> vector<128x128xf32>
      %c0_25 = arith.constant 0 : index
      %c0_26 = arith.constant 0 : index
      %30 = vector.load %arg8[%c0_25, %c0_26] : memref<1x128xf32, #tpu.memory_space<vmem>>, vector<1x128xf32>
      %31 = vector.broadcast %30 : vector<1x128xf32> to vector<128x128xf32>
      %32 = arith.addf %29, %31 : vector<128x128xf32>
      %c0_27 = arith.constant 0 : index
      %c0_28 = arith.constant 0 : index
      %33 = vector.load %arg10[%c0_27, %c0_28] : memref<128x128xf32, #tpu.memory_space<vmem>>, vector<128x128xf32>
      tpu.vector_store %arg10[%c0_27, %c0_28], %32 {strides = array<i32>} : memref<128x128xf32, #tpu.memory_space<vmem>>, vector<128x128xf32>,
    } else {
    }
    return
  }
  func.func @transform_0(%arg0: i32) -> (i32, i32) {
    %c0_i32 = arith.constant 0 : i32
    %c0_i32_0 = arith.constant 0 : i32
    return %arg0, %c0_i32 : i32, i32
  }
  func.func @transform_1(%arg0: i32) -> (i32, i32) {
    %c0_i32 = arith.constant 0 : i32
    %c0_i32_0 = arith.constant 0 : i32
    return %arg0, %c0_i32 : i32, i32
  }
  func.func @transform_2(%arg0: i32) -> (i32, i32) {
    %c0_i32 = arith.constant 0 : i32
    %c0_i32_0 = arith.constant 0 : i32
    return %arg0, %c0_i32 : i32, i32
  }
  func.func @transform_3(%arg0: i32) -> (i32, i32) {
    %c0_i32 = arith.constant 0 : i32
    %c0_i32_0 = arith.constant 0 : i32
    %c0_i32_1 = arith.constant 0 : i32
    return %c0_i32, %c0_i32_0 : i32, i32
  }
  func.func @transform_4(%arg0: i32) -> (i32, i32) {
    %c0_i32 = arith.constant 0 : i32
    %c0_i32_0 = arith.constant 0 : i32
    %c0_i32_1 = arith.constant 0 : i32
    return %c0_i32, %c0_i32_0 : i32, i32
  }
  func.func @transform_5(%arg0: i32) -> (i32, i32) {
    %c0_i32 = arith.constant 0 : i32
    %c0_i32_0 = arith.constant 0 : i32
    %c0_i32_1 = arith.constant 0 : i32
    return %c0_i32, %c0_i32_0 : i32, i32
  }
  func.func @transform_6(%arg0: i32) -> (i32, i32) {
    %c0_i32 = arith.constant 0 : i32
    %c0_i32_0 = arith.constant 0 : i32
    %c0_i32_1 = arith.constant 0 : i32
    return %c0_i32, %c0_i32_0 : i32, i32
  }
  func.func @transform_7(%arg0: i32) -> (i32, i32) {
    %c0_i32 = arith.constant 0 : i32
    %c0_i32_0 = arith.constant 0 : i32
    %c0_i32_1 = arith.constant 0 : i32
    return %c0_i32, %c0_i32_0 : i32, i32
  }
  func.func @transform_8(%arg0: i32) -> (i32, i32) {
    %c0_i32 = arith.constant 0 : i32
    %c0_i32_0 = arith.constant 0 : i32
    %c0_i32_1 = arith.constant 0 : i32
    return %c0_i32, %c0_i32_0 : i32, i32
  }
  func.func @transform_9(%arg0: i32) -> (i32, i32) {
    %c0_i32 = arith.constant 0 : i32
    %c0_i32_0 = arith.constant 0 : i32
    %c0_i32_1 = arith.constant 0 : i32
    return %c0_i32, %c0_i32_0 : i32, i32
  }
}

</mosaic_0001>

<bundles_post_ra>
// kernel: tpu_custom_call.1
= control target key start
LH: loop header
LB: loop body
LE: loop exit
PB: predicated region body
PF: predicated region fallthrough
CT: control target
= control target key end

     0   :  { %15 = vsyncpa [#allocation4], 0  ;;  %s1824_s0 = inlined_call_operand.vmem [shape: bf16[512,16], index: 0, kind: input, shape index: {}]   ;;  %s1825_s1 = inlined_call_operand.vmem [shape: bf16[512,128], index: 1, kind: input, shape index: {}]   ;;  %s1826_s2 = inlined_call_operand.vmem [shape: f32[512,1], index: 2, kind: input, shape index: {}]   ;;  %s1827_s3 = inlined_call_operand.vmem [shape: f32[128,1], index: 3, kind: input, shape index: {}]   ;;  %s1828_s4 = inlined_call_operand.vmem [shape: bf16[16,128], index: 4, kind: input, shape index: {}]   ;;  %s1829_s5 = inlined_call_operand.vmem [shape: f32[1,128], index: 5, kind: input, shape index: {}]   ;;  %s1830_s6 = inlined_call_operand.vmem [shape: bf16[128,128], index: 6, kind: input, shape index: {}]   ;;  %s1831_s7 = inlined_call_operand.vmem [shape: f32[1,128], index: 7, kind: input, shape index: {}]   ;;  %s1832_s8 = inlined_call_operand.hbm [shape: bf16[128,128], index: 8, kind: output, shape index: {0}]   ;;  %s1833_s9 = inlined_call_operand.hbm [shape: f32[128,128], index: 9, kind: output, shape index: {1}]  }
   0x1   :  { %16 = vsyncpa [#allocation6], 0  ;;  %s1628_s30 = smov 0  }
   0x2 LB: > { %s1634_s10 = sadd.s32 4294967295, %s1567_s30   ;;  %p1232_p0 = scmp.ge.s32.totalorder %s1567_s30, 1  ;;  %s1567_s30 = sphi %s1628_s30, %s22_s30  }
   0x3   : > { %p305_p1 = scmp.lt.s32.totalorder %s1567_s30, 5 }
   0x5   : > { %p306_p2 = pnand %p1232_p0, %p305_p1 }
   0x6   : > { %s1233_s11 = sshll.u32 (!%p306_p2), %s1634_s10, 4  ;;  %p1239_p4 = scmp.ne.s32.totalorder (!%p306_p2), %s1634_s10, 0 }
   0x7   : > { %309 = sbr.rel (%p306_p2) target bundleno = 757 (0x2f5), region = 52  ;;  %p347_p3 = scmp.lt.s32.totalorder (!%p306_p2), %s1233_s11, 63 }
   0xc   : > { %s1835_s11 = smov (!%p347_p3, %s1233_s11), 63  ;;  %368 = sbr.rel (%p1239_p4) target bundleno = 34 (0x22), region = 56 }
   0xd   : > { %s1234_s12 = sshll.u32 %s1835_s11, 2  ;;  %s1238_s13 = sshll.u32 %s1835_s11, 3 }
   0xe   : > { %s1642_s16 = scalar_lea.vmem %s1824_s0, %s1234_s12  ;;  %s1647_s19 = scalar_lea.vmem %s1825_s1, %s1234_s12 }
   0xf   : > { %s1652_s22 = scalar_lea.vmem %s1826_s2, %s1238_s13 }
  0x11   : > { %v1569_v0 = vmov 0.0  }
  0x12   : > { %369 = vst [vmem:[#allocation2 + $0x30] sm:$0xff] %v1569_v0 }
  0x13   : > { %370 = vst [vmem:[#allocation2] sm:$0xff] %v1569_v0 }
  0x14   : > { %371 = vst [vmem:[#allocation2 + $0x58] sm:$0xff] %v1569_v0 }
  0x15   : > { %372 = vst [vmem:[#allocation2 + $0x18] sm:$0xff] %v1569_v0 }
  0x16   : > { %373 = vst [vmem:[#allocation2 + $0x50] sm:$0xff] %v1569_v0 }
  0x17   : > { %374 = vst [vmem:[#allocation2 + $0x68] sm:$0xff] %v1569_v0 }
  0x18   : > { %375 = vst [vmem:[#allocation2 + $0x8] sm:$0xff] %v1569_v0 }
  0x19   : > { %376 = vst [vmem:[#allocation2 + $0x48] sm:$0xff] %v1569_v0 }
  0x1a   : > { %377 = vst [vmem:[#allocation2 + $0x40] sm:$0xff] %v1569_v0 }
  0x1b   : > { %378 = vst [vmem:[#allocation2 + $0x20] sm:$0xff] %v1569_v0 }
  0x1c   : > { %379 = vst [vmem:[#allocation2 + $0x10] sm:$0xff] %v1569_v0 }
  0x1d   : > { %380 = vst [vmem:[#allocation2 + $0x38] sm:$0xff] %v1569_v0 }
  0x1e   : > { %381 = vst [vmem:[#allocation2 + $0x60] sm:$0xff] %v1569_v0 }
  0x1f   : > { %382 = vst [vmem:[#allocation2 + $0x70] sm:$0xff] %v1569_v0 }
  0x20   : > { %383 = vst [vmem:[#allocation2 + $0x78] sm:$0xff] %v1569_v0 }
  0x21   : > { %384 = vst [vmem:[#allocation2 + $0x28] sm:$0xff] %v1569_v0 }
  0x22 PF: > { %v539_v1 = vld [vmem:[%s1652_s22 + $0x60] sm:$0xff]  ;;  %v1570_v3 = vmov 0   ;;  %v541_v5 = vld [vmem:[%s1652_s22 + $0x70] sm:$0xff]  ;;  %vm453_vm0 = vcmask 130048   ;;  %v1360_v6 = vld [vmem:[%s1642_s16 + $0x28] sm:$0xff]  ;;  %p1316_p5 = scmp.ne.s32.totalorder %s1634_s10, 3 }
  0x23   : > { %v1363_v2 = vld [vmem:[%s1828_s4] sm:$0xff]  ;;  %1490 = vset.pattern.permute.xlu1 %v1570_v3  ;;  %1489 = vset.pattern.permute.xlu0 %v1570_v3  ;;  %v540_v7 = vld [vmem:[%s1652_s22 + $0x68] sm:$0xff]  ;;  %v542_v8 = vld [vmem:[%s1652_s22 + $0x78] sm:$0xff] }
  0x24   : > { %v1355_v4 = vld [vmem:[%s1642_s16] sm:$0xff]  ;;  %605 = vperm.xlu1 %1490, %v539_v1   ;;  %485 = vmatpush.bf16.msra.mxu0 %v1363_v2  ;;  %v536_v9 = vld [vmem:[%s1652_s22 + $0x48] sm:$0xff]  ;;  %v1361_v12 = vld [vmem:[%s1642_s16 + $0x30] sm:$0xff] }
  0x25   : > { %1427 = vmatpush.bf16.msra.mxu3 %v1363_v2  ;;  %615 = vperm.xlu0 %1489, %v541_v5   ;;  %v535_v10 = vld [vmem:[%s1652_s22 + $0x40] sm:$0xff]  ;;  %v1356_v11 = vld [vmem:[%s1642_s16 + $0x8] sm:$0xff]  ;;  %v537_v13 = vld [vmem:[%s1652_s22 + $0x50] sm:$0xff] }
  0x26   : > { %1491 = vset.pattern.permute.xlu2 %v1570_v3  ;;  %v531_v14 = vld [vmem:[%s1652_s22 + $0x20] sm:$0xff]  ;;  %v534_v15 = vld [vmem:[%s1652_s22 + $0x38] sm:$0xff]  ;;  %v529_v18 = vld [vmem:[%s1652_s22 + $0x10] sm:$0xff] }
  0x27   : > { %1276 = vmatmul.msk.bf16.vlgmr.msra.gmra.mxu0 %vm453_vm0, %v1355_v4  ;;  %595 = vperm.xlu2 %1491, %v537_v13   ;;  %v538_v16 = vld [vmem:[%s1652_s22 + $0x58] sm:$0xff]  ;;  %v1357_v19 = vld [vmem:[%s1642_s16 + $0x10] sm:$0xff]  ;;  %v532_v22 = vld [vmem:[%s1652_s22 + $0x28] sm:$0xff] }
  0x28   : > { %1281 = vmatmul.msk.bf16.vlgmr.msra.gmra.mxu3 %vm453_vm0, %v1360_v6  ;;  %v530_v17 = vld [vmem:[%s1652_s22 + $0x18] sm:$0xff]  ;;  %v533_v21 = vld [vmem:[%s1652_s22 + $0x30] sm:$0xff]  ;;  %v1359_v24 = vld [vmem:[%s1642_s16 + $0x20] sm:$0xff] }
  0x29   : > { %v1362_v20 = vld [vmem:[%s1642_s16 + $0x38] sm:$0xff]  ;;  %v528_v25 = vld [vmem:[%s1652_s22 + $0x8] sm:$0xff]  ;;  %v1364_v26 = vld [vmem:[%s1647_s19] sm:$0xff] }
  0x2a   : > { %v1358_v23 = vld [vmem:[%s1642_s16 + $0x18] sm:$0xff]  ;;  %v1365_v27 = vld [vmem:[%s1647_s19 + $0x8] sm:$0xff]  ;;  %v527_v28 = vld [vmem:[%s1652_s22] sm:$0xff] }
  0x2b   : > { %v1366_v29 = vld [vmem:[%s1647_s19 + $0x10] sm:$0xff]  ;;  %v1367_v31 = vld [vmem:[%s1647_s19 + $0x18] sm:$0xff]  ;;  %v1368_v37 = vld [vmem:[%s1647_s19 + $0x20] sm:$0xff] }
  0x2c   : > { %610 = vperm.xlu1 %1490, %v540_v7   ;;  %v1369_v44 = vld [vmem:[%s1647_s19 + $0x28] sm:$0xff]  ;;  %v1492_v50 = vld [vmem:[%s1829_s5] ss:$0 sm:$0xff]  ;;  %v1370_v59 = vld [vmem:[%s1647_s19 + $0x30] sm:$0xff] }
  0x2d   : > { %620 = vperm.xlu0 %1489, %v542_v8  }
  0x2f   : > { %600 = vperm.xlu2 %1491, %v538_v16   ;;  %v1371_v16 = vld [vmem:[%s1647_s19 + $0x38] sm:$0xff] }
  0x34   : > { %590 = vperm.xlu1 %1490, %v536_v9  }
  0x35   : > { %585 = vperm.xlu0 %1489, %v535_v10  }
  0x37   : > { %1277 = vmatmul.msk.bf16.gmra.mxu0 %vm453_vm0, %v1356_v11  ;;  %575 = vperm.xlu2 %1491, %v533_v21  }
  0x38   : > { %1282 = vmatmul.msk.bf16.gmra.mxu3 %vm453_vm0, %v1361_v12 }
  0x3c   : > { %565 = vperm.xlu1 %1490, %v531_v14  }
  0x3d   : > { %580 = vperm.xlu0 %1489, %v534_v15  }
  0x3f   : > { %570 = vperm.xlu2 %1491, %v532_v22  }
  0x44   : > { %560 = vperm.xlu1 %1490, %v530_v17  }
  0x45   : > { %555 = vperm.xlu0 %1489, %v529_v18  }
  0x47   : > { %1278 = vmatmul.msk.bf16.gmra.mxu0 %vm453_vm0, %v1357_v19  ;;  %545 = vperm.xlu2 %1491, %v527_v28  }
  0x48   : > { %1283 = vmatmul.msk.bf16.gmra.mxu3 %vm453_vm0, %v1362_v20 }
  0x4d   : > { %550 = vperm.xlu0 %1489, %v528_v25  }
  0x57   : > { %1279 = vmatmul.msk.bf16.gmra.mxu0 %vm453_vm0, %v1358_v23 }
  0x67   : > { %1280 = vmatmul.msk.bf16.gmra.mxu0 %vm453_vm0, %v1359_v24 }
  0x79   : > { %727 = vxpose.xlu1.c.b16.start [1/8] %v1364_v26, 128 }
  0x81   : > { %v596_v41 = vpop.permute.xlu2 %595 }
  0x89   : > { %728 = vxpose.xlu1.c.b16.cont [2/8] %v1365_v27, 128  ;;  %v601_v46 = vpop.permute.xlu2 %600 }
  0x91   : > { %v576_v58 = vpop.permute.xlu2 %575 }
  0x96   : > { %v606_v49 = vpop.permute.xlu1 %605 }
  0x97   : > { %v616_v34 = vpop.permute.xlu0 %615 }
  0x99   : > { %729 = vxpose.xlu1.c.b16.cont [3/8] %v1366_v29, 128  ;;  %v571_v10 = vpop.permute.xlu2 %570 }
  0x9e   : > { %v611_v0 = vpop.permute.xlu1 %610 }
  0x9f   : > { %v621_v40 = vpop.permute.xlu0 %620 }
  0xa1   : > { %v546_v18 = vpop.permute.xlu2 %545 }
  0xa4   : > { %v487_v30 = vpop.f32.mrf.mxu0 }
  0xa5   : > { %v488_v13 = vadd.f32 %v1492_v50, %v487_v30 }
  0xa6   : > { %v591_v14 = vpop.permute.xlu1 %590 }
  0xa7   : > { %v586_v45 = vpop.permute.xlu0 %585  ;;  %v623_v19 = vmul.f32 %v546_v18, %v488_v13  ;;  %v657_v18 = vld [vmem:[#allocation2 + $0x10] sm:$0xff] }
  0xa9   : > { %730 = vxpose.xlu1.c.b16.cont [4/8] %v1367_v31, 128 }
  0xab   : > { %v512_v32 = vpop.f32.mrf.mxu3 }
  0xac   : > { %v489_v33 = vpop.f32.mrf.mxu0  ;;  %v513_v60 = vadd.f32 %v1492_v50, %v512_v32 }
  0xad   : > { %v490_v11 = vadd.f32 %v1492_v50, %v489_v33 }
  0xae   : > { %v633_v3 = vmul.f32 %v596_v41, %v513_v60  ;;  %v566_v27 = vpop.permute.xlu1 %565 }
  0xaf   : > { %v581_v52 = vpop.permute.xlu0 %580 }
  0xb3   : > { %v514_v35 = vpop.f32.mrf.mxu3 }
  0xb4   : > { %v1694_v36 = vpop.f32.mrf.mxu0  ;;  %v515_v61 = vadd.f32 %v1492_v50, %v514_v35 }
  0xb5   : > { %v493_v35 = vadd.f32 %v1492_v50, %v1694_v36 }
  0xb6   : > { %v634_v5 = vmul.f32 %v601_v46, %v515_v61  ;;  %v561_v41 = vpop.permute.xlu1 %560  ;;  %v650_v61 = vld [vmem:[#allocation2 + $0x18] sm:$0xff] }
  0xb7   : > { %v556_v6 = vpop.permute.xlu0 %555 }
  0xb8   : > { %v644_v9 = vpack.c.bf16 %v634_v5, %v633_v3  ;;  %v652_v3 = vld [vmem:[#allocation2 + $0x68] sm:$0xff] }
  0xb9   : > { %731 = vxpose.xlu1.c.b16.cont [5/8] %v1368_v37, 128 }
  0xbb   : > { %v517_v38 = vpop.f32.mrf.mxu3 }
  0xbc   : > { %v1697_v39 = vpop.f32.mrf.mxu0  ;;  %v518_v62 = vadd.f32 %v1492_v50, %v517_v38 }
  0xbd   : > { %v495_v37 = vadd.f32 %v1492_v50, %v1697_v39 }
  0xbe   : > { %v635_v4 = vmul.f32 %v606_v49, %v518_v62 }
  0xbf   : > { %v551_v12 = vpop.permute.xlu0 %550 }
  0xc0   : > { %v624_v17 = vmul.f32 %v551_v12, %v490_v11  ;;  %v655_v12 = vld [vmem:[#allocation2 + $0x40] sm:$0xff] }
  0xc2   : > { %v639_v21 = vpack.c.bf16 %v624_v17, %v623_v19 }
  0xc3   : > { %v519_v42 = vpop.f32.mrf.mxu3 }
  0xc4   : > { %v1699_v43 = vpop.f32.mrf.mxu0  ;;  %v520_v54 = vadd.f32 %v1492_v50, %v519_v42  ;;  %v626_v42 = vmul.f32 %v561_v41, %v495_v37 }
  0xc5   : > { %v498_v33 = vadd.f32 %v1492_v50, %v1699_v43 }
  0xc6   : > { %v636_v1 = vmul.f32 %v611_v0, %v520_v54  ;;  %v651_v0 = vld [vmem:[#allocation2 + $0x50] sm:$0xff] }
  0xc8   : > { %v645_v8 = vpack.c.bf16 %v636_v1, %v635_v4 }
  0xc9   : > { %732 = vxpose.xlu1.c.b16.cont [6/8] %v1369_v44, 128  ;;  %v625_v44 = vmul.f32 %v556_v6, %v493_v35  ;;  %v653_v6 = vld [vmem:[#allocation2 + $0x8] sm:$0xff] }
  0xcb   : > { %v522_v47 = vpop.f32.mrf.mxu3  ;;  %v640_v46 = vpack.c.bf16 %v626_v42, %v625_v44 }
  0xcc   : > { %v499_v48 = vpop.f32.mrf.mxu0  ;;  %v523_v51 = vadd.f32 %v1492_v50, %v522_v47 }
  0xcd   : > { %v500_v32 = vadd.f32 %v1492_v50, %v499_v48 }
  0xce   : > { %v637_v55 = vmul.f32 %v616_v34, %v523_v51 }
  0xcf   : > { %v628_v38 = vmul.f32 %v571_v10, %v500_v32 }
  0xd3   : > { %v524_v53 = vpop.f32.mrf.mxu3 }
  0xd4   : > { %v525_v56 = vadd.f32 %v1492_v50, %v524_v53  ;;  %v502_v57 = vpop.f32.mrf.mxu0 }
  0xd5   : > { %v503_v22 = vadd.f32 %v1492_v50, %v502_v57 }
  0xd6   : > { %v638_v63 = vmul.f32 %v621_v40, %v525_v56  ;;  %v627_v40 = vmul.f32 %v566_v27, %v498_v33  ;;  %v660_v27 = vld [vmem:[#allocation2 + $0x70] sm:$0xff]  ;;  %v662_v33 = vld [vmem:[#allocation2 + $0x28] sm:$0xff] }
  0xd7   : > { %v629_v28 = vmul.f32 %v576_v58, %v503_v22  ;;  %v649_v58 = vld [vmem:[#allocation2 + $0x58] sm:$0xff] }
  0xd8   : > { %v646_v2 = vpack.c.bf16 %v638_v63, %v637_v55  ;;  %v648_v55 = vld [vmem:[#allocation2] sm:$0xff] }
  0xd9   : > { %733 = vxpose.xlu1.c.b16.cont [7/8] %v1370_v59, 128 }
  0xda   : > { %743 = vmatpush.bf16.msra.mxu1 %v646_v2  ;;  %1428 = vmatpush.bf16.msra.mxu2 %v646_v2 }
  0xdc   : > { %v504_v7 = vpop.f32.mrf.mxu0 }
  0xdd   : > { %v505_v23 = vadd.f32 %v1492_v50, %v504_v7 }
  0xde   : > { %744 = vmatpush.bf16.msra.mxu1 %v645_v8  ;;  %1429 = vmatpush.bf16.msra.mxu2 %v645_v8 }
  0xdf   : > { %v630_v29 = vmul.f32 %v581_v52, %v505_v23  ;;  %v647_v52 = vld [vmem:[#allocation2 + $0x30] sm:$0xff] }
  0xe1   : > { %v642_v34 = vpack.c.bf16 %v630_v29, %v629_v28 }
  0xe2   : > { %745 = vmatpush.bf16.msra.mxu1 %v644_v9  ;;  %1430 = vmatpush.bf16.msra.mxu2 %v644_v9  ;;  %v654_v9 = vld [vmem:[#allocation2 + $0x48] sm:$0xff] }
  0xe4   : > { %v507_v15 = vpop.f32.mrf.mxu0 }
  0xe5   : > { %v508_v20 = vadd.f32 %v1492_v50, %v507_v15  ;;  %v656_v15 = vld [vmem:[#allocation2 + $0x20] sm:$0xff] }
  0xe7   : > { %v631_v25 = vmul.f32 %v586_v45, %v508_v20  ;;  %v641_v45 = vpack.c.bf16 %v628_v38, %v627_v40 }
  0xe9   : > { %734 = vxpose.xlu1.c.b16.end [8/8] %v1371_v16, 128 }
  0xec   : > { %v509_v24 = vpop.f32.mrf.mxu0 }
  0xed   : > { %v510_v26 = vadd.f32 %v1492_v50, %v509_v24  ;;  %v659_v24 = vld [vmem:[#allocation2 + $0x60] sm:$0xff] }
  0xef   : > { %v632_v31 = vmul.f32 %v591_v14, %v510_v26 }
  0xf1   : > { %v643_v30 = vpack.c.bf16 %v632_v31, %v631_v25  ;;  %v661_v31 = vld [vmem:[#allocation2 + $0x78] sm:$0xff] }
  0xf3   : > { %746 = vmatpush.bf16.msra.mxu1 %v643_v30  ;;  %1431 = vmatpush.bf16.msra.mxu2 %v643_v30 }
  0xf7   : > { %747 = vmatpush.bf16.msra.mxu1 %v642_v34  ;;  %1432 = vmatpush.bf16.msra.mxu2 %v642_v34 }
  0xfb   : > { %748 = vmatpush.bf16.msra.mxu1 %v641_v45  ;;  %1433 = vmatpush.bf16.msra.mxu2 %v641_v45 }
  0xff   : > { %749 = vmatpush.bf16.msra.mxu1 %v640_v46  ;;  %1434 = vmatpush.bf16.msra.mxu2 %v640_v46 }
 0x103   : > { %750 = vmatpush.bf16.msra.mxu1 %v639_v21  ;;  %1435 = vmatpush.bf16.msra.mxu2 %v639_v21  ;;  %v658_v21 = vld [vmem:[#allocation2 + $0x38] sm:$0xff] }
 0x125   : > { %v735_v43 = vpop.trf.xlu1 }
 0x126   : > { %751 = vmatmul.bf16.vlgmr.msra.gmra.mxu1 %v735_v43 }
 0x135   : > { %v736_v36 = vpop.trf.xlu1 }
 0x136   : > { %756 = vmatmul.bf16.gmra.mxu1 %v736_v36 }
 0x145   : > { %v737_v39 = vpop.trf.xlu1 }
 0x146   : > { %761 = vmatmul.bf16.gmra.mxu1 %v737_v39 }
 0x155   : > { %v738_v47 = vpop.trf.xlu1 }
 0x156   : > { %766 = vmatmul.bf16.gmra.mxu1 %v738_v47 }
 0x165   : > { %v739_v48 = vpop.trf.xlu1 }
 0x166   : > { %771 = vmatmul.bf16.vlgmr.msra.gmra.mxu2 %v739_v48 }
 0x175   : > { %v740_v49 = vpop.trf.xlu1 }
 0x176   : > { %776 = vmatmul.bf16.gmra.mxu2 %v740_v49 }
 0x185   : > { %v741_v50 = vpop.trf.xlu1 }
 0x186   : > { %781 = vmatmul.bf16.gmra.mxu2 %v741_v50 }
 0x195   : > { %v742_v51 = vpop.trf.xlu1 }
 0x196   : > { %786 = vmatmul.bf16.gmra.mxu2 %v742_v51 }
 0x1a3   : > { %v752_v53 = vpop.f32.mrf.mxu1 }
 0x1a4   : > { %v792_v54 = vadd.f32 %v752_v53, %v647_v52 }
 0x1a6   : > { %808 = vst [vmem:[#allocation2 + $0x30] sm:$0xff] %v792_v54 }
 0x1ab   : > { %v754_v56 = vpop.f32.mrf.mxu1 }
 0x1ac   : > { %v793_v57 = vadd.f32 %v754_v56, %v648_v55 }
 0x1ae   : > { %809 = vst [vmem:[#allocation2] sm:$0xff] %v793_v57 }
 0x1b3   : > { %v757_v59 = vpop.f32.mrf.mxu1 }
 0x1b4   : > { %v794_v60 = vadd.f32 %v757_v59, %v649_v58 }
 0x1b6   : > { %810 = vst [vmem:[#allocation2 + $0x58] sm:$0xff] %v794_v60 }
 0x1bb   : > { %v759_v62 = vpop.f32.mrf.mxu1 }
 0x1bc   : > { %v795_v63 = vadd.f32 %v759_v62, %v650_v61 }
 0x1be   : > { %811 = vst [vmem:[#allocation2 + $0x18] sm:$0xff] %v795_v63 }
 0x1c3   : > { %v762_v1 = vpop.f32.mrf.mxu1 }
 0x1c4   : > { %v796_v2 = vadd.f32 %v762_v1, %v651_v0 }
 0x1c6   : > { %812 = vst [vmem:[#allocation2 + $0x50] sm:$0xff] %v796_v2 }
 0x1cb   : > { %v764_v4 = vpop.f32.mrf.mxu1 }
 0x1cc   : > { %v797_v5 = vadd.f32 %v764_v4, %v652_v3 }
 0x1ce   : > { %813 = vst [vmem:[#allocation2 + $0x68] sm:$0xff] %v797_v5 }
 0x1d3   : > { %v767_v7 = vpop.f32.mrf.mxu1 }
 0x1d4   : > { %v798_v8 = vadd.f32 %v767_v7, %v653_v6 }
 0x1d6   : > { %814 = vst [vmem:[#allocation2 + $0x8] sm:$0xff] %v798_v8 }
 0x1db   : > { %v769_v10 = vpop.f32.mrf.mxu1 }
 0x1dc   : > { %v799_v11 = vadd.f32 %v769_v10, %v654_v9 }
 0x1de   : > { %815 = vst [vmem:[#allocation2 + $0x48] sm:$0xff] %v799_v11 }
 0x1e9   : > { %v772_v13 = vpop.f32.mrf.mxu2 }
 0x1ea   : > { %v800_v14 = vadd.f32 %v772_v13, %v655_v12 }
 0x1ec   : > { %816 = vst [vmem:[#allocation2 + $0x40] sm:$0xff] %v800_v14 }
 0x1f1   : > { %v774_v16 = vpop.f32.mrf.mxu2 }
 0x1f2   : > { %v801_v17 = vadd.f32 %v774_v16, %v656_v15 }
 0x1f4   : > { %817 = vst [vmem:[#allocation2 + $0x20] sm:$0xff] %v801_v17 }
 0x1f9   : > { %v777_v19 = vpop.f32.mrf.mxu2 }
 0x1fa   : > { %v802_v20 = vadd.f32 %v777_v19, %v657_v18 }
 0x1fc   : > { %818 = vst [vmem:[#allocation2 + $0x10] sm:$0xff] %v802_v20 }
 0x201   : > { %v779_v22 = vpop.f32.mrf.mxu2 }
 0x202   : > { %v803_v23 = vadd.f32 %v779_v22, %v658_v21 }
 0x204   : > { %819 = vst [vmem:[#allocation2 + $0x38] sm:$0xff] %v803_v23 }
 0x209   : > { %v782_v25 = vpop.f32.mrf.mxu2 }
 0x20a   : > { %v804_v26 = vadd.f32 %v782_v25, %v659_v24 }
 0x20c   : > { %820 = vst [vmem:[#allocation2 + $0x60] sm:$0xff] %v804_v26 }
 0x211   : > { %v784_v28 = vpop.f32.mrf.mxu2 }
 0x212   : > { %v805_v29 = vadd.f32 %v784_v28, %v660_v27 }
 0x214   : > { %821 = vst [vmem:[#allocation2 + $0x70] sm:$0xff] %v805_v29 }
 0x219   : > { %v787_v32 = vpop.f32.mrf.mxu2 }
 0x21a   : > { %v806_v30 = vadd.f32 %v787_v32, %v661_v31 }
 0x21c   : > { %822 = vst [vmem:[#allocation2 + $0x78] sm:$0xff] %v806_v30 }
 0x220   : > { %827 = sbr.rel (%p1316_p5) target bundleno = 745 (0x2e9), region = 60 }
 0x221   : > { %v789_v34 = vpop.f32.mrf.mxu2 }
 0x222   : > { %v807_v35 = vadd.f32 %v789_v34, %v662_v33 }
 0x224   : > { %823 = vst [vmem:[#allocation2 + $0x28] sm:$0xff] %v807_v35 }
 0x225   : > { %v846_v37 = vld [vmem:[%s1827_s3 + $0x10] sm:$0xff]  ;;  %v844_v38 = vld [vmem:[%s1827_s3] sm:$0xff]  ;;  %v1379_v40 = vld [vmem:[%s1830_s6 + $0x38] sm:$0xff]  ;;  %v1571_v41 = vmov 0  }
 0x226   : > { %1494 = vset.pattern.permute.xlu1 %v1571_v41  ;;  %1493 = vset.pattern.permute.xlu0 %v1571_v41  ;;  %v1378_v42 = vld [vmem:[%s1830_s6 + $0x30] sm:$0xff]  ;;  %v848_v44 = vld [vmem:[%s1827_s3 + $0x20] sm:$0xff]  ;;  %v847_v45 = vld [vmem:[%s1827_s3 + $0x18] sm:$0xff] }
 0x227   : > { %872 = vperm.xlu1 %1494, %v846_v37   ;;  %862 = vperm.xlu0 %1493, %v844_v38   ;;  %v845_v46 = vld [vmem:[%s1827_s3 + $0x8] sm:$0xff]  ;;  %v1376_v36 = vld [vmem:[%s1830_s6 + $0x20] sm:$0xff]  ;;  %v851_v47 = vld [vmem:[%s1827_s3 + $0x38] sm:$0xff] }
 0x228   : > { %1064 = vmatpush.bf16.msra.mxu0 %v1379_v40  ;;  %1436 = vmatpush.bf16.msra.mxu1 %v1379_v40  ;;  %v1377_v43 = vld [vmem:[%s1830_s6 + $0x28] sm:$0xff]  ;;  %v850_v48 = vld [vmem:[%s1827_s3 + $0x30] sm:$0xff]  ;;  %v1375_v49 = vld [vmem:[%s1830_s6 + $0x18] sm:$0xff] }
 0x229   : > { %1437 = vmatpush.bf16.msra.mxu2 %v1379_v40  ;;  %1438 = vmatpush.bf16.msra.mxu3 %v1379_v40  ;;  %v849_v39 = vld [vmem:[%s1827_s3 + $0x28] sm:$0xff]  ;;  %v1374_v50 = vld [vmem:[%s1830_s6 + $0x10] sm:$0xff]  ;;  %v852_v51 = vld [vmem:[%s1827_s3 + $0x40] sm:$0xff] }
 0x22a   : > { %1495 = vset.pattern.permute.xlu2 %v1571_v41  ;;  %v854_v52 = vld [vmem:[%s1827_s3 + $0x50] sm:$0xff]  ;;  %v853_v53 = vld [vmem:[%s1827_s3 + $0x48] sm:$0xff]  ;;  %v1372_v55 = vld [vmem:[%s1830_s6] sm:$0xff] }
 0x22b   : > { %882 = vperm.xlu2 %1495, %v848_v44   ;;  %v1373_v54 = vld [vmem:[%s1830_s6 + $0x8] sm:$0xff]  ;;  %v828_v56 = vld [vmem:[#allocation2 + $0x30] sm:$0xff]  ;;  %v829_v57 = vld [vmem:[#allocation2] sm:$0xff] }
 0x22c   : > { %1065 = vmatpush.bf16.msra.mxu0 %v1378_v42  ;;  %1439 = vmatpush.bf16.msra.mxu1 %v1378_v42  ;;  %v855_v58 = vld [vmem:[%s1827_s3 + $0x58] sm:$0xff]  ;;  %v832_v59 = vld [vmem:[#allocation2 + $0x50] sm:$0xff]  ;;  %v833_v60 = vld [vmem:[#allocation2 + $0x68] sm:$0xff]  ;;  %v988_v3 = vpack.c.bf16 %v829_v57, %v828_v56 }
 0x22d   : > { %1440 = vmatpush.bf16.msra.mxu2 %v1378_v42  ;;  %1441 = vmatpush.bf16.msra.mxu3 %v1378_v42  ;;  %v1771_v61 = vld [vmem:[#allocation2 + $0x40] sm:$0xff]  ;;  %v1777_v0 = vld [vmem:[#allocation2 + $0x70] sm:$0xff]  ;;  %v857_v1 = vld [vmem:[%s1827_s3 + $0x68] sm:$0xff]  ;;  %v990_v4 = vpack.c.bf16 %v833_v60, %v832_v59 }
 0x22e   : > { %v1773_v62 = vld [vmem:[#allocation2 + $0x20] sm:$0xff]  ;;  %v858_v7 = vld [vmem:[%s1827_s3 + $0x70] sm:$0xff]  ;;  %v859_v8 = vld [vmem:[%s1827_s3 + $0x78] sm:$0xff] }
 0x22f   : > { %877 = vperm.xlu1 %1494, %v847_v45   ;;  %867 = vperm.xlu0 %1493, %v845_v46   ;;  %v1775_v63 = vld [vmem:[#allocation2 + $0x60] sm:$0xff]  ;;  %v992_v5 = vpack.c.bf16 %v1773_v62, %v1771_v61  ;;  %v830_v9 = vld [vmem:[#allocation2 + $0x58] sm:$0xff]  ;;  %v834_v11 = vld [vmem:[#allocation2 + $0x8] sm:$0xff] }
 0x230   : > { %1066 = vmatpush.bf16.msra.mxu0 %v1377_v43  ;;  %1442 = vmatpush.bf16.msra.mxu1 %v1377_v43  ;;  %v856_v2 = vld [vmem:[%s1827_s3 + $0x60] sm:$0xff]  ;;  %v994_v6 = vpack.c.bf16 %v1777_v0, %v1775_v63  ;;  %v831_v10 = vld [vmem:[#allocation2 + $0x18] sm:$0xff]  ;;  %v835_v12 = vld [vmem:[#allocation2 + $0x48] sm:$0xff] }
 0x231   : > { %1443 = vmatpush.bf16.msra.mxu2 %v1377_v43  ;;  %1444 = vmatpush.bf16.msra.mxu3 %v1377_v43  ;;  %v838_v13 = vld [vmem:[#allocation2 + $0x10] sm:$0xff]  ;;  %v839_v14 = vld [vmem:[#allocation2 + $0x38] sm:$0xff]  ;;  %v843_v16 = vld [vmem:[#allocation2 + $0x28] sm:$0xff]  ;;  %v989_v17 = vpack.c.bf16 %v831_v10, %v830_v9  ;;  %v991_v18 = vpack.c.bf16 %v835_v12, %v834_v11 }
 0x232   : > { %v842_v15 = vld [vmem:[#allocation2 + $0x78] sm:$0xff]  ;;  %v993_v19 = vpack.c.bf16 %v839_v14, %v838_v13 }
 0x233   : > { %887 = vperm.xlu2 %1495, %v849_v39   ;;  %v995_v20 = vpack.c.bf16 %v843_v16, %v842_v15 }
 0x234   : > { %1067 = vmatpush.bf16.msra.mxu0 %v1376_v36  ;;  %1445 = vmatpush.bf16.msra.mxu1 %v1376_v36 }
 0x235   : > { %1446 = vmatpush.bf16.msra.mxu2 %v1376_v36  ;;  %1447 = vmatpush.bf16.msra.mxu3 %v1376_v36 }
 0x237   : > { %897 = vperm.xlu1 %1494, %v851_v47   ;;  %892 = vperm.xlu0 %1493, %v850_v48  }
 0x238   : > { %1068 = vmatpush.bf16.msra.mxu0 %v1375_v49  ;;  %1448 = vmatpush.bf16.msra.mxu1 %v1375_v49 }
 0x239   : > { %1449 = vmatpush.bf16.msra.mxu2 %v1375_v49  ;;  %1450 = vmatpush.bf16.msra.mxu3 %v1375_v49 }
 0x23b   : > { %902 = vperm.xlu2 %1495, %v852_v51  }
 0x23c   : > { %1069 = vmatpush.bf16.msra.mxu0 %v1374_v50  ;;  %1451 = vmatpush.bf16.msra.mxu1 %v1374_v50 }
 0x23d   : > { %1452 = vmatpush.bf16.msra.mxu2 %v1374_v50  ;;  %1453 = vmatpush.bf16.msra.mxu3 %v1374_v50 }
 0x23f   : > { %912 = vperm.xlu1 %1494, %v854_v52   ;;  %907 = vperm.xlu0 %1493, %v853_v53  }
 0x240   : > { %1070 = vmatpush.bf16.msra.mxu0 %v1373_v54  ;;  %1454 = vmatpush.bf16.msra.mxu1 %v1373_v54 }
 0x241   : > { %1455 = vmatpush.bf16.msra.mxu2 %v1373_v54  ;;  %1456 = vmatpush.bf16.msra.mxu3 %v1373_v54 }
 0x243   : > { %917 = vperm.xlu2 %1495, %v855_v58  }
 0x244   : > { %1071 = vmatpush.bf16.msra.mxu0 %v1372_v55  ;;  %1457 = vmatpush.bf16.msra.mxu1 %v1372_v55 }
 0x245   : > { %1458 = vmatpush.bf16.msra.mxu2 %v1372_v55  ;;  %1459 = vmatpush.bf16.msra.mxu3 %v1372_v55 }
 0x247   : > { %927 = vperm.xlu1 %1494, %v857_v1   ;;  %922 = vperm.xlu0 %1493, %v856_v2  }
 0x248   : > { %1072 = vmatmul.bf16.vlgmr.msra.gmra.mxu0 %v988_v3  ;;  %1082 = vmatmul.bf16.vlgmr.msra.gmra.mxu1 %v990_v4 }
 0x249   : > { %1092 = vmatmul.bf16.vlgmr.msra.gmra.mxu2 %v992_v5  ;;  %1102 = vmatmul.bf16.vlgmr.msra.gmra.mxu3 %v994_v6 }
 0x24b   : > { %932 = vperm.xlu2 %1495, %v858_v7  }
 0x24f   : > { %937 = vperm.xlu0 %1493, %v859_v8  }
 0x258   : > { %1077 = vmatmul.bf16.gmra.mxu0 %v989_v17  ;;  %1087 = vmatmul.bf16.gmra.mxu1 %v991_v18 }
 0x259   : > { %1097 = vmatmul.bf16.gmra.mxu2 %v993_v19  ;;  %1107 = vmatmul.bf16.gmra.mxu3 %v995_v20 }
 0x285   : > { %v883_v21 = vpop.permute.xlu2 %882 }
 0x286   : > { %v944_v22 = vmul.f32 %v883_v21, %v832_v59 }
 0x28d   : > { %v888_v23 = vpop.permute.xlu2 %887 }
 0x28e   : > { %v945_v24 = vmul.f32 %v888_v23, %v833_v60  ;;  %v1496_v60 = vld [vmem:[%s1831_s7] ss:$0 sm:$0xff] }
 0x290   : > { %v1393_v25 = vpack.c.bf16 %v945_v24, %v944_v22 }
 0x292   : > { %1421 = vst [vmem:[#allocation3 + $0x10] sm:$0xff] %v1393_v25  }
 0x295   : > { %v903_v37 = vpop.permute.xlu2 %902 }
 0x296   : > { %v948_v46 = vmul.f32 %v903_v37, %v1771_v61 }
 0x299   : > { %v873_v26 = vpop.permute.xlu1 %872  ;;  %v863_v27 = vpop.permute.xlu0 %862 }
 0x29a   : > { %v942_v28 = vmul.f32 %v873_v26, %v830_v9  ;;  %v940_v29 = vmul.f32 %v863_v27, %v828_v56 }
 0x29d   : > { %v918_v45 = vpop.permute.xlu2 %917 }
 0x29e   : > { %v951_v43 = vmul.f32 %v918_v45, %v839_v14 }
 0x2a1   : > { %v878_v31 = vpop.permute.xlu1 %877  ;;  %v868_v32 = vpop.permute.xlu0 %867 }
 0x2a2   : > { %v943_v30 = vmul.f32 %v878_v31, %v831_v10  ;;  %v941_v33 = vmul.f32 %v868_v32, %v829_v57 }
 0x2a4   : > { %v1388_v34 = vpack.c.bf16 %v943_v30, %v942_v28  ;;  %v1383_v35 = vpack.c.bf16 %v941_v33, %v940_v29 }
 0x2a5   : > { %v933_v56 = vpop.permute.xlu2 %932 }
 0x2a6   : > { %1420 = vst [vmem:[#allocation3 + $0x8] sm:$0xff] %v1388_v34   ;;  %v954_v58 = vmul.f32 %v933_v56, %v842_v15 }
 0x2a7   : > { %1384 = vst [vmem:[#allocation3] sm:$0xff] %v1383_v35  }
 0x2a9   : > { %v898_v38 = vpop.permute.xlu1 %897  ;;  %v893_v40 = vpop.permute.xlu0 %892 }
 0x2aa   : > { %v947_v41 = vmul.f32 %v898_v38, %v835_v12  ;;  %v946_v42 = vmul.f32 %v893_v40, %v834_v11 }
 0x2ac   : > { %v1398_v44 = vpack.c.bf16 %v947_v41, %v946_v42 }
 0x2ae   : > { %1422 = vst [vmem:[#allocation3 + $0x18] sm:$0xff] %v1398_v44  }
 0x2b1   : > { %v913_v36 = vpop.permute.xlu1 %912  ;;  %v908_v39 = vpop.permute.xlu0 %907 }
 0x2b2   : > { %v950_v47 = vmul.f32 %v913_v36, %v838_v13  ;;  %v949_v48 = vmul.f32 %v908_v39, %v1773_v62 }
 0x2b4   : > { %v1403_v49 = vpack.c.bf16 %v949_v48, %v948_v46  ;;  %v1408_v50 = vpack.c.bf16 %v951_v43, %v950_v47 }
 0x2b6   : > { %1423 = vst [vmem:[#allocation3 + $0x20] sm:$0xff] %v1403_v49  }
 0x2b7   : > { %1424 = vst [vmem:[#allocation3 + $0x28] sm:$0xff] %v1408_v50  }
 0x2b9   : > { %v928_v51 = vpop.permute.xlu1 %927  ;;  %v923_v52 = vpop.permute.xlu0 %922 }
 0x2ba   : > { %v953_v53 = vmul.f32 %v928_v51, %v1777_v0  ;;  %v952_v54 = vmul.f32 %v923_v52, %v1775_v63 }
 0x2bc   : > { %v1413_v55 = vpack.c.bf16 %v953_v53, %v952_v54 }
 0x2be   : > { %1425 = vst [vmem:[#allocation3 + $0x30] sm:$0xff] %v1413_v55  }
 0x2c1   : > { %v938_v57 = vpop.permute.xlu0 %937 }
 0x2c2   : > { %v955_v59 = vmul.f32 %v938_v57, %v843_v16 }
 0x2c4   : > { %v1418_v61 = vpack.c.bf16 %v955_v59, %v954_v58 }
 0x2c5   : > { %v1073_v62 = vpop.f32.mrf.mxu0  ;;  %v1083_v1 = vpop.f32.mrf.mxu1 }
 0x2c6   : > { %1426 = vst [vmem:[#allocation3 + $0x38] sm:$0xff] %v1418_v61   ;;  %v1074_v2 = vadd.f32 %v1496_v60, %v1073_v62  ;;  %v1084_v3 = vadd.f32 %v1496_v60, %v1083_v1 }
 0x2c8   : > { %1113 = vst [vmem:[#allocation5] sm:$0xff] %v1074_v2 }
 0x2c9   : > { %1117 = vst [vmem:[#allocation5 + $0x20] sm:$0xff] %v1084_v3 }
 0x2cc   : > { %v1093_v0 = vpop.f32.mrf.mxu2  ;;  %v1103_v63 = vpop.f32.mrf.mxu3 }
 0x2cd   : > { %v1094_v4 = vadd.f32 %v1496_v60, %v1093_v0  ;;  %v1104_v5 = vadd.f32 %v1496_v60, %v1103_v63  ;;  %v1075_v6 = vpop.f32.mrf.mxu0  ;;  %v1085_v7 = vpop.f32.mrf.mxu1 }
 0x2ce   : > { %v1076_v8 = vadd.f32 %v1496_v60, %v1075_v6  ;;  %v1086_v9 = vadd.f32 %v1496_v60, %v1085_v7 }
 0x2cf   : > { %1121 = vst [vmem:[#allocation5 + $0x40] sm:$0xff] %v1094_v4 }
 0x2d0   : > { %1125 = vst [vmem:[#allocation5 + $0x60] sm:$0xff] %v1104_v5 }
 0x2d1   : > { %1114 = vst [vmem:[#allocation5 + $0x8] sm:$0xff] %v1076_v8 }
 0x2d2   : > { %1118 = vst [vmem:[#allocation5 + $0x28] sm:$0xff] %v1086_v9 }
 0x2d4   : > { %v1095_v10 = vpop.f32.mrf.mxu2  ;;  %v1105_v11 = vpop.f32.mrf.mxu3 }
 0x2d5   : > { %v1096_v12 = vadd.f32 %v1496_v60, %v1095_v10  ;;  %v1106_v13 = vadd.f32 %v1496_v60, %v1105_v11  ;;  %v1078_v14 = vpop.f32.mrf.mxu0  ;;  %v1088_v15 = vpop.f32.mrf.mxu1 }
 0x2d6   : > { %v1079_v16 = vadd.f32 %v1496_v60, %v1078_v14  ;;  %v1089_v17 = vadd.f32 %v1496_v60, %v1088_v15 }
 0x2d7   : > { %1122 = vst [vmem:[#allocation5 + $0x48] sm:$0xff] %v1096_v12 }
 0x2d8   : > { %1126 = vst [vmem:[#allocation5 + $0x68] sm:$0xff] %v1106_v13 }
 0x2d9   : > { %1115 = vst [vmem:[#allocation5 + $0x10] sm:$0xff] %v1079_v16 }
 0x2da   : > { %1119 = vst [vmem:[#allocation5 + $0x30] sm:$0xff] %v1089_v17 }
 0x2dc   : > { %v1098_v18 = vpop.f32.mrf.mxu2  ;;  %v1108_v19 = vpop.f32.mrf.mxu3 }
 0x2dd   : > { %v1099_v20 = vadd.f32 %v1496_v60, %v1098_v18  ;;  %v1109_v21 = vadd.f32 %v1496_v60, %v1108_v19  ;;  %v1080_v22 = vpop.f32.mrf.mxu0  ;;  %v1090_v23 = vpop.f32.mrf.mxu1 }
 0x2de   : > { %v1081_v24 = vadd.f32 %v1496_v60, %v1080_v22  ;;  %v1091_v25 = vadd.f32 %v1496_v60, %v1090_v23 }
 0x2df   : > { %1123 = vst [vmem:[#allocation5 + $0x50] sm:$0xff] %v1099_v20 }
 0x2e0   : > { %1127 = vst [vmem:[#allocation5 + $0x70] sm:$0xff] %v1109_v21 }
 0x2e1   : > { %1116 = vst [vmem:[#allocation5 + $0x18] sm:$0xff] %v1081_v24 }
 0x2e2   : > { %1120 = vst [vmem:[#allocation5 + $0x38] sm:$0xff] %v1091_v25 }
 0x2e4   : > { %v1100_v26 = vpop.f32.mrf.mxu2  ;;  %v1110_v27 = vpop.f32.mrf.mxu3 }
 0x2e5   : > { %v1101_v28 = vadd.f32 %v1496_v60, %v1100_v26  ;;  %v1111_v29 = vadd.f32 %v1496_v60, %v1110_v27 }
 0x2e7   : > { %1124 = vst [vmem:[#allocation5 + $0x58] sm:$0xff] %v1101_v28 }
 0x2e8   : > { %1128 = vst [vmem:[#allocation5 + $0x78] sm:$0xff] %v1111_v29 }
 0x2e9 PF: > { %p1468_p6 = scmp.eq.s32.totalorder %s1634_s10, 3  ;;  %s1572_s20 = smov [#allocation3]  }
 0x2ea   : > { %s1134_s21 = sshll.u32 %s1572_s20, 4  ;;  %s1136_s24 = sshll.u32 %s1832_s8, 4  ;;  %s1135_s21 = int_to_ptr.vmem [resolvable:$true] %s1134_s21  ;;  %s1137_s24 = int_to_ptr.hbm [resolvable:$true] %s1136_s24 }
 0x2eb   : > { %s1573_s25 = smov 64   ;;  %s1574_s26 = smov 4  }
 0x2ec   : > { %1461 = dma.vmem_to_hbm [thread:$0]  (%p1468_p6), %s1135_s21, 1024, %s1137_s24, [#allocation4], %s1573_s25, %s1573_s25, %s1574_s26  }
 0x2ed   : > { %s1150_s29 = sshll.u32 %s1833_s9, 4  ;;  %s1575_s11 = smov [#allocation5]   ;;  %s1151_s29 = int_to_ptr.hbm [resolvable:$true] %s1150_s29 }
 0x2ee   : > { %s1148_s12 = sshll.u32 %s1575_s11, 4  ;;  %s1576_s13 = smov 128   ;;  %s1149_s12 = int_to_ptr.vmem [resolvable:$true] %s1148_s12 }
 0x2ef   : > { %s1577_s14 = smov 8  }
 0x2f0   : > { %1463 = dma.vmem_to_hbm [thread:$0]  (%p1468_p6), %s1149_s12, 2048, %s1151_s29, [#allocation6], %s1576_s13, %s1576_s13, %s1577_s14  }
 0x2f1   : > { %1558 = dma.done.wait (%p1468_p6), [#allocation4], 1024  }
 0x2f2   : > { %1560 = vsyncadd (%p1468_p6), [#allocation4], 4294966272 }
 0x2f3   : > { %1562 = dma.done.wait (%p1468_p6), [#allocation6], 2048  }
 0x2f4   : > { %1564 = vsyncadd (%p1468_p6), [#allocation6], 4294965248 }
 0x2f5 PF: > { %s22_s30 = sadd.s32 1, %s1567_s30  }
 0x2f6   : > { %p19_p7 = scmp.ge.s32.totalorder %s22_s30, 6  }
 0x2f8   :  { %21 = sbr.rel (!%p19_p7) target bundleno = 2 (0x2), region = 101 }
 0x2fd   :  { %1172 = vsyncpa [#allocation4], 1 }
 0x2fe   :  { %1174 = vsyncpa [#allocation4 + $0x1], 1 }
 0x2ff   :  { %1175 = vsyncpa [#allocation6], 1 }

</bundles_post_ra>
